<compile_context>
chip_gen: v7x
topology: tpu7x:2x2x1
jax: 0.10.0
libtpu: 0.0.40
codegen_flags: <defaults>
</compile_context>

<pallas_src>
import jax
import jax.numpy as jnp
from jax import lax
from jax.experimental import pallas as pl
from jax.experimental.pallas import tpu as pltpu


def _round_up(x, m):
    return (x + m - 1) // m * m


def _cdiv(a, b):
    return (a + b - 1) // b


def _sublane_quantum(dtype):
    # sublane quantum by element width: f32 -> 8, bf16/f16 -> 16, int8 -> 32
    return {4: 8, 2: 16, 1: 32}[jnp.dtype(dtype).itemsize]


def _ccc_kernel(min_len_ref,                       # SMEM prefetch: (n_batch_tiles,)
                y_pred_ref, y_true_ref, len_ref,   # (TB,TS), (TB,TS), (TB,1)
                ccc_ref,                           # (TB,1) output
                st_ref, sp_ref, stt_ref, spp_ref, stp_ref,   # (TB,LW) f32 accs
                sht_ref, shp_ref):                 # (TB,1) f32 centering shifts
    b_idx = pl.program_id(0)
    s_idx = pl.program_id(1)
    TB, TS = y_true_ref.shape
    LW = st_ref.shape[1]
    NC = TS // LW                                   # exact by construction

    @pl.when(s_idx == 0)
    def _init():
        st_ref[...] = jnp.zeros_like(st_ref)
        sp_ref[...] = jnp.zeros_like(sp_ref)
        stt_ref[...] = jnp.zeros_like(stt_ref)
        spp_ref[...] = jnp.zeros_like(spp_ref)
        stp_ref[...] = jnp.zeros_like(stp_ref)
        # per-row shift = first element; var/cov are shift invariant, so this
        # fights E[x^2]-mean^2 cancellation for non-zero-mean signals.
        sht_ref[...] = y_true_ref[:, 0:1].astype(jnp.float32)
        shp_ref[...] = y_pred_ref[:, 0:1].astype(jnp.float32)

    def make_body(masked):
        def body():
            c_t = sht_ref[...]
            c_p = shp_ref[...]
            if masked:
                thr = len_ref[...] - s_idx * TS                     # (TB,1) i32
                col = lax.broadcasted_iota(jnp.int32, (1, LW), 1)   # step-indep
            zero = jnp.zeros((TB, LW), jnp.float32)
            p_t, p_p, p_tt, p_pp, p_tp = zero, zero, zero, zero, zero
            for j in range(NC):                       # static, lane-aligned
                t = y_true_ref[:, j * LW:(j + 1) * LW].astype(jnp.float32) - c_t
                p = y_pred_ref[:, j * LW:(j + 1) * LW].astype(jnp.float32) - c_p
                if masked:
                    valid = col < (thr - j * LW)
                    # select (not multiply): NaN/garbage in ragged tails is safe
                    t = jnp.where(valid, t, 0.0)
                    p = jnp.where(valid, p, 0.0)
                p_t = p_t + t
                p_p = p_p + p
                p_tt = p_tt + t * t
                p_pp = p_pp + p * p
                p_tp = p_tp + t * p
            st_ref[...] += p_t
            sp_ref[...] += p_p
            stt_ref[...] += p_tt
            spp_ref[...] += p_pp
            stp_ref[...] += p_tp
        return body

    # fast path: whole tile lies inside every row's valid length -> no masking
    tile_fully_valid = (s_idx + 1) * TS <= min_len_ref[b_idx]
    pl.when(tile_fully_valid)(make_body(masked=False))
    pl.when(jnp.logical_not(tile_fully_valid))(make_body(masked=True))

    @pl.when(s_idx == pl.num_programs(1) - 1)
    def _finalize():
        n_i = len_ref[...]                                # min(seq_len, S)
        n = jnp.maximum(n_i, 1).astype(jnp.float32)
        s_t = jnp.sum(st_ref[...], axis=1, keepdims=True)   # one XLU reduce
        s_p = jnp.sum(sp_ref[...], axis=1, keepdims=True)   # per acc, per
        s_tt = jnp.sum(stt_ref[...], axis=1, keepdims=True) # batch tile
        s_pp = jnp.sum(spp_ref[...], axis=1, keepdims=True)
        s_tp = jnp.sum(stp_ref[...], axis=1, keepdims=True)
        m_t = s_t / n                                      # exact division
        m_p = s_p / n
        var_t = s_tt / n - m_t * m_t
        var_p = s_pp / n - m_p * m_p
        cov = s_tp / n - m_t * m_p
        dmean = (m_t + sht_ref[...]) - (m_p + shp_ref[...])   # undo the shift
        denom = var_t + var_p + dmean * dmean
        ccc = 2.0 * cov / denom
        # guard seq_len==0 (batch padding / degenerate rows): emit 0, not NaN
        ccc_ref[...] = jnp.where(n_i > 0, ccc, 0.0)


def _avg_pool1d_no_pad_count(y, kernel_size):
    """avg_pool1d(kernel, stride=1, padding=(k-1)//2, count_include_pad=False)."""
    # TODO(synk): even label_smooth kernel sizes change the output length in
    # PyTorch; only odd kernel sizes are supported here.
    assert kernel_size % 2 == 1, "label_smooth must be odd"
    B, S = y.shape
    p = (kernel_size - 1) // 2
    yf = jnp.pad(y.astype(jnp.float32), ((0, 0), (p, p)))
    sums = sum(yf[:, i:i + S] for i in range(kernel_size))
    j = jnp.arange(S)
    counts = (jnp.minimum(j + p, S - 1) - jnp.maximum(j - p, 0) + 1).astype(jnp.float32)
    return (sums / counts[None, :]).astype(y.dtype)


def ccc_loss(y_pred, y_true, seq_lens=None, label_smooth=None,
             *, seq_tile=4096, batch_tile_cap=128):
    """Pallas implementation of CCCLoss.forward. Returns scalar f32 loss."""
    B, S = y_pred.shape
    assert y_true.shape == (B, S)
    if label_smooth is not None:
        y_true = _avg_pool1d_no_pad_count(y_true, label_smooth)

    if seq_lens is None:
        eff_len = jnp.full((B,), S, dtype=jnp.int32)
    else:
        eff_len = jnp.clip(jnp.asarray(seq_lens, jnp.int32), 0, S)

    q = max(_sublane_quantum(y_pred.dtype), _sublane_quantum(y_true.dtype))
    batch_tile_cap = _round_up(max(batch_tile_cap, q), q)

    # ---- batch tiling: never pad the inputs; ragged tail blocks + where-mask.
    TB = min(batch_tile_cap, _round_up(B, q))
    if B >= 2 * q:
        # expose >= 2 "parallel" batch blocks so v7x's two TensorCores both run.
        TB = min(TB, _round_up(_cdiv(B, 2), q))
    if TB >= B:
        TB = B                      # single full-dim block, no ragged batch tail
    n_bt = _cdiv(B, TB)
    # TODO(synk): for very small B on v7x, folding sequence halves into the
    # batch axis would engage the second TensorCore; not done here.

    # ---- sequence tiling: multiple of 128 (or the full dim when S <= 128).
    seq_tile = max(128, (seq_tile // 128) * 128)
    if S <= 128:
        TS = S
    elif S % 128 == 0:
        TS = min(seq_tile, S)
    else:
        TS = min(seq_tile, (S // 128) * 128)
    n_st = _cdiv(S, TS)
    LW = TS if TS < 128 else 128

    # ---- scalar-prefetched per-batch-tile min valid length (fast-path test).
    pad_rows = n_bt * TB - B
    if pad_rows:
        eff_pad = jnp.concatenate([eff_len, jnp.full((pad_rows,), S, jnp.int32)])
    else:
        eff_pad = eff_len
    tile_min = eff_pad.reshape(n_bt, TB).min(axis=1).astype(jnp.int32)

    len2d = eff_len[:, None]                                   # (B, 1) int32

    itemsize = max(jnp.dtype(y_pred.dtype).itemsize, jnp.dtype(y_true.dtype).itemsize)
    in_bytes = 2 * 2 * TB * TS * itemsize        # 2 inputs, double-buffered
    scratch_bytes = (5 * TB * LW + 2 * TB) * 4
    # Default tiles keep this well under v7x's 64 MiB physical VMEM.
    vmem_limit = int(max(32 * 1024 * 1024, in_bytes + scratch_bytes + (8 << 20)))

    ccc_rows = pl.pallas_call(
        _ccc_kernel,
        out_shape=jax.ShapeDtypeStruct((B, 1), jnp.float32),
        grid_spec=pltpu.PrefetchScalarGridSpec(
            num_scalar_prefetch=1,
            grid=(n_bt, n_st),
            in_specs=[
                pl.BlockSpec((TB, TS), lambda b, s, ml: (b, s)),
                pl.BlockSpec((TB, TS), lambda b, s, ml: (b, s)),
                pl.BlockSpec((TB, 1), lambda b, s, ml: (b, 0)),
            ],
            out_specs=pl.BlockSpec((TB, 1), lambda b, s, ml: (b, 0)),
            scratch_shapes=[pltpu.VMEM((TB, LW), jnp.float32) for _ in range(5)]
                          + [pltpu.VMEM((TB, 1), jnp.float32) for _ in range(2)],
        ),
        compiler_params=pltpu.CompilerParams(
            dimension_semantics=("parallel", "arbitrary"),
            vmem_limit_bytes=vmem_limit),
    )(tile_min, y_pred, y_true, len2d)

    return 1.0 - jnp.mean(ccc_rows)


def _ccc_loss_ref(y_pred, y_true, seq_lens=None, label_smooth=None):
    """Pure-JAX reference mirroring the PyTorch module (sanity check)."""
    y_pred = y_pred.astype(jnp.float32)
    y_true = y_true.astype(jnp.float32)
    B, S = y_pred.shape
    if seq_lens is not None:
        idx = jnp.arange(S)[None, :]
        mask = (idx < jnp.asarray(seq_lens)[:, None]).astype(jnp.float32)
    else:
        mask = jnp.ones((B, S), jnp.float32)
    if label_smooth is not None:
        y_true = _avg_pool1d_no_pad_count(y_true, label_smooth)
    msum = jnp.sum(mask, axis=1, keepdims=True)
    tm = jnp.sum(y_true * mask, axis=1, keepdims=True) / msum
    pm = jnp.sum(y_pred * mask, axis=1, keepdims=True) / msum
    tv = jnp.sum(mask * (y_true - tm) ** 2, axis=1, keepdims=True) / msum
    pv = jnp.sum(mask * (y_pred - pm) ** 2, axis=1, keepdims=True) / msum
    cov = jnp.sum(mask * (y_true - tm) * (y_pred - pm), axis=1, keepdims=True) / msum
    ccc = jnp.mean(2.0 * cov / (tv + pv + (tm - pm) ** 2), axis=0)
    return 1.0 - ccc[0]


if __name__ == "__main__":
    key = jax.random.PRNGKey(0)
    k1, k2, k3, k4, k5 = jax.random.split(key, 5)

    # --- tiny shape from the module docstring: (batch, seq) = (2, 8), masked f32
    B, S = 2, 8
    y_pred = jax.random.normal(k1, (B, S), dtype=jnp.float32)
    y_true = jax.random.normal(k2, (B, S), dtype=jnp.float32)
    seq_lens = jnp.array([8, 5], dtype=jnp.int32)
    loss = ccc_loss(y_pred, y_true, seq_lens=seq_lens)
    jax.block_until_ready(loss)
    ref = _ccc_loss_ref(y_pred, y_true, seq_lens=seq_lens)
    assert jnp.allclose(loss, ref, rtol=2e-3, atol=2e-3), (loss, ref)

    # --- no-mask + label smoothing, exercising the bf16 DMA passthrough
    loss2 = ccc_loss(y_pred.astype(jnp.bfloat16), y_true.astype(jnp.bfloat16),
                     seq_lens=None, label_smooth=3)
    jax.block_until_ready(loss2)
    ref2 = _ccc_loss_ref(y_pred.astype(jnp.bfloat16), y_true.astype(jnp.bfloat16),
                         seq_lens=None, label_smooth=3)
    assert jnp.allclose(loss2, ref2, rtol=5e-2, atol=5e-2), (loss2, ref2)

    # --- ragged multi-tile path: non-divisible B and S, masked + fast tiles,
    #     non-zero-mean signals (exercises the centering shift)
    B3, S3 = 20, 300
    yp3 = jax.random.normal(k3, (B3, S3), dtype=jnp.float32) + 0.7
    yt3 = jax.random.normal(k4, (B3, S3), dtype=jnp.float32) + 0.5
    lens3 = jax.random.randint(k5, (B3,), 2, S3 + 1, dtype=jnp.int32)
    loss3 = ccc_loss(yp3, yt3, seq_lens=lens3, seq_tile=128, batch_tile_cap=16)
    jax.block_until_ready(loss3)
    ref3 = _ccc_loss_ref(yp3, yt3, seq_lens=lens3)
    assert jnp.allclose(loss3, ref3, rtol=2e-3, atol=2e-3), (loss3, ref3)

    print("KERNEL_OK")
</pallas_src>

<mosaic_0001>
module attributes {stable_mosaic.version = 11 : i64} {
  func.func @_ccc_kernel(%arg0: i32, %arg1: i32, %arg2: memref<1xi32, #tpu.memory_space<smem>>, %arg3: memref<2x8xf32, #tpu.memory_space<vmem>>, %arg4: memref<2x8xf32, #tpu.memory_space<vmem>>, %arg5: memref<2x1xi32, #tpu.memory_space<vmem>>, %arg6: memref<2x1xf32, #tpu.memory_space<vmem>>, %arg7: memref<2x8xf32, #tpu.memory_space<vmem>>, %arg8: memref<2x8xf32, #tpu.memory_space<vmem>>, %arg9: memref<2x8xf32, #tpu.memory_space<vmem>>, %arg10: memref<2x8xf32, #tpu.memory_space<vmem>>, %arg11: memref<2x8xf32, #tpu.memory_space<vmem>>, %arg12: memref<2x1xf32, #tpu.memory_space<vmem>>, %arg13: memref<2x1xf32, #tpu.memory_space<vmem>>) attributes {dimension_semantics = [#tpu.dimension_semantics<parallel>, #tpu.dimension_semantics<arbitrary>], iteration_bounds = array<i64: 1, 1>, scalar_prefetch = 1 : i64, scratch_operands = 7 : i64, tpu.core_type = #tpu.core_type<tc>, window_params = [{transform_indices = @transform_0, window_bounds = array<i64: 2, 8>}, {transform_indices = @transform_1, window_bounds = array<i64: 2, 8>}, {transform_indices = @transform_2, window_bounds = array<i64: 2, 1>}, {transform_indices = @transform_3, window_bounds = array<i64: 2, 1>}]} {
    %c0_i32 = arith.constant 0 : i32
    %0 = arith.cmpi eq, %arg1, %c0_i32 : i32
    %1 = arith.extui %0 : i1 to i32
    %c0_i32_0 = arith.constant 0 : i32
    %2 = arith.cmpi ne, %1, %c0_i32_0 : i32
    scf.if %2 {
      %cst = arith.constant 0.000000e+00 : f32
      %16 = vector.broadcast %cst : f32 to vector<2x8xf32>
      %c0 = arith.constant 0 : index
      %c0_5 = arith.constant 0 : index
      %17 = vector.load %arg7[%c0, %c0_5] : memref<2x8xf32, #tpu.memory_space<vmem>>, vector<2x8xf32>
      tpu.vector_store %arg7[%c0, %c0_5], %16 {strides = array<i32>} : memref<2x8xf32, #tpu.memory_space<vmem>>, vector<2x8xf32>,
      %cst_6 = arith.constant 0.000000e+00 : f32
      %18 = vector.broadcast %cst_6 : f32 to vector<2x8xf32>
      %c0_7 = arith.constant 0 : index
      %c0_8 = arith.constant 0 : index
      %19 = vector.load %arg8[%c0_7, %c0_8] : memref<2x8xf32, #tpu.memory_space<vmem>>, vector<2x8xf32>
      tpu.vector_store %arg8[%c0_7, %c0_8], %18 {strides = array<i32>} : memref<2x8xf32, #tpu.memory_space<vmem>>, vector<2x8xf32>,
      %cst_9 = arith.constant 0.000000e+00 : f32
      %20 = vector.broadcast %cst_9 : f32 to vector<2x8xf32>
      %c0_10 = arith.constant 0 : index
      %c0_11 = arith.constant 0 : index
      %21 = vector.load %arg9[%c0_10, %c0_11] : memref<2x8xf32, #tpu.memory_space<vmem>>, vector<2x8xf32>
      tpu.vector_store %arg9[%c0_10, %c0_11], %20 {strides = array<i32>} : memref<2x8xf32, #tpu.memory_space<vmem>>, vector<2x8xf32>,
      %cst_12 = arith.constant 0.000000e+00 : f32
      %22 = vector.broadcast %cst_12 : f32 to vector<2x8xf32>
      %c0_13 = arith.constant 0 : index
      %c0_14 = arith.constant 0 : index
      %23 = vector.load %arg10[%c0_13, %c0_14] : memref<2x8xf32, #tpu.memory_space<vmem>>, vector<2x8xf32>
      tpu.vector_store %arg10[%c0_13, %c0_14], %22 {strides = array<i32>} : memref<2x8xf32, #tpu.memory_space<vmem>>, vector<2x8xf32>,
      %cst_15 = arith.constant 0.000000e+00 : f32
      %24 = vector.broadcast %cst_15 : f32 to vector<2x8xf32>
      %c0_16 = arith.constant 0 : index
      %c0_17 = arith.constant 0 : index
      %25 = vector.load %arg11[%c0_16, %c0_17] : memref<2x8xf32, #tpu.memory_space<vmem>>, vector<2x8xf32>
      tpu.vector_store %arg11[%c0_16, %c0_17], %24 {strides = array<i32>} : memref<2x8xf32, #tpu.memory_space<vmem>>, vector<2x8xf32>,
      %c0_18 = arith.constant 0 : index
      %c0_19 = arith.constant 0 : index
      %26 = vector.load %arg4[%c0_18, %c0_19] : memref<2x8xf32, #tpu.memory_space<vmem>>, vector<2x1xf32>
      %c0_20 = arith.constant 0 : index
      %c0_21 = arith.constant 0 : index
      %27 = vector.load %arg12[%c0_20, %c0_21] : memref<2x1xf32, #tpu.memory_space<vmem>>, vector<2x1xf32>
      tpu.vector_store %arg12[%c0_20, %c0_21], %26 {strides = array<i32>} : memref<2x1xf32, #tpu.memory_space<vmem>>, vector<2x1xf32>,
      %c0_22 = arith.constant 0 : index
      %c0_23 = arith.constant 0 : index
      %28 = vector.load %arg3[%c0_22, %c0_23] : memref<2x8xf32, #tpu.memory_space<vmem>>, vector<2x1xf32>
      %c0_24 = arith.constant 0 : index
      %c0_25 = arith.constant 0 : index
      %29 = vector.load %arg13[%c0_24, %c0_25] : memref<2x1xf32, #tpu.memory_space<vmem>>, vector<2x1xf32>
      tpu.vector_store %arg13[%c0_24, %c0_25], %28 {strides = array<i32>} : memref<2x1xf32, #tpu.memory_space<vmem>>, vector<2x1xf32>,
    } else {
    }
    %c1_i32 = arith.constant 1 : i32
    %3 = arith.addi %arg1, %c1_i32 : i32
    %c8_i32 = arith.constant 8 : i32
    %4 = arith.muli %3, %c8_i32 : i32
    %5 = arith.index_cast %arg0 : i32 to index
    %6 = memref.load %arg2[%5] : memref<1xi32, #tpu.memory_space<smem>>
    %7 = arith.cmpi sle, %4, %6 : i32
    %8 = arith.extui %7 : i1 to i32
    %c0_i32_1 = arith.constant 0 : i32
    %9 = arith.cmpi ne, %8, %c0_i32_1 : i32
    scf.if %9 {
      %c0 = arith.constant 0 : index
      %c0_5 = arith.constant 0 : index
      %16 = vector.load %arg12[%c0, %c0_5] : memref<2x1xf32, #tpu.memory_space<vmem>>, vector<2x1xf32>
      %c0_6 = arith.constant 0 : index
      %c0_7 = arith.constant 0 : index
      %17 = vector.load %arg13[%c0_6, %c0_7] : memref<2x1xf32, #tpu.memory_space<vmem>>, vector<2x1xf32>
      %cst = arith.constant 0.000000e+00 : f32
      %18 = vector.broadcast %cst : f32 to vector<2x8xf32>
      %c0_8 = arith.constant 0 : index
      %c0_9 = arith.constant 0 : index
      %19 = vector.load %arg4[%c0_8, %c0_9] : memref<2x8xf32, #tpu.memory_space<vmem>>, vector<2x8xf32>
      %20 = vector.broadcast %16 : vector<2x1xf32> to vector<2x8xf32>
      %21 = arith.subf %19, %20 : vector<2x8xf32>
      %c0_10 = arith.constant 0 : index
      %c0_11 = arith.constant 0 : index
      %22 = vector.load %arg3[%c0_10, %c0_11] : memref<2x8xf32, #tpu.memory_space<vmem>>, vector<2x8xf32>
      %23 = vector.broadcast %17 : vector<2x1xf32> to vector<2x8xf32>
      %24 = arith.subf %22, %23 : vector<2x8xf32>
      %25 = arith.addf %18, %21 : vector<2x8xf32>
      %26 = arith.addf %18, %24 : vector<2x8xf32>
      %27 = arith.mulf %21, %21 : vector<2x8xf32>
      %28 = arith.addf %18, %27 : vector<2x8xf32>
      %29 = arith.mulf %24, %24 : vector<2x8xf32>
      %30 = arith.addf %18, %29 : vector<2x8xf32>
      %31 = arith.mulf %21, %24 : vector<2x8xf32>
      %32 = arith.addf %18, %31 : vector<2x8xf32>
      %c0_12 = arith.constant 0 : index
      %c0_13 = arith.constant 0 : index
      %33 = vector.load %arg7[%c0_12, %c0_13] : memref<2x8xf32, #tpu.memory_space<vmem>>, vector<2x8xf32>
      %34 = arith.addf %33, %25 : vector<2x8xf32>
      %c0_14 = arith.constant 0 : index
      %c0_15 = arith.constant 0 : index
      %35 = vector.load %arg7[%c0_14, %c0_15] : memref<2x8xf32, #tpu.memory_space<vmem>>, vector<2x8xf32>
      tpu.vector_store %arg7[%c0_14, %c0_15], %34 {strides = array<i32>} : memref<2x8xf32, #tpu.memory_space<vmem>>, vector<2x8xf32>,
      %c0_16 = arith.constant 0 : index
      %c0_17 = arith.constant 0 : index
      %36 = vector.load %arg8[%c0_16, %c0_17] : memref<2x8xf32, #tpu.memory_space<vmem>>, vector<2x8xf32>
      %37 = arith.addf %36, %26 : vector<2x8xf32>
      %c0_18 = arith.constant 0 : index
      %c0_19 = arith.constant 0 : index
      %38 = vector.load %arg8[%c0_18, %c0_19] : memref<2x8xf32, #tpu.memory_space<vmem>>, vector<2x8xf32>
      tpu.vector_store %arg8[%c0_18, %c0_19], %37 {strides = array<i32>} : memref<2x8xf32, #tpu.memory_space<vmem>>, vector<2x8xf32>,
      %c0_20 = arith.constant 0 : index
      %c0_21 = arith.constant 0 : index
      %39 = vector.load %arg9[%c0_20, %c0_21] : memref<2x8xf32, #tpu.memory_space<vmem>>, vector<2x8xf32>
      %40 = arith.addf %39, %28 : vector<2x8xf32>
      %c0_22 = arith.constant 0 : index
      %c0_23 = arith.constant 0 : index
      %41 = vector.load %arg9[%c0_22, %c0_23] : memref<2x8xf32, #tpu.memory_space<vmem>>, vector<2x8xf32>
      tpu.vector_store %arg9[%c0_22, %c0_23], %40 {strides = array<i32>} : memref<2x8xf32, #tpu.memory_space<vmem>>, vector<2x8xf32>,
      %c0_24 = arith.constant 0 : index
      %c0_25 = arith.constant 0 : index
      %42 = vector.load %arg10[%c0_24, %c0_25] : memref<2x8xf32, #tpu.memory_space<vmem>>, vector<2x8xf32>
      %43 = arith.addf %42, %30 : vector<2x8xf32>
      %c0_26 = arith.constant 0 : index
      %c0_27 = arith.constant 0 : index
      %44 = vector.load %arg10[%c0_26, %c0_27] : memref<2x8xf32, #tpu.memory_space<vmem>>, vector<2x8xf32>
      tpu.vector_store %arg10[%c0_26, %c0_27], %43 {strides = array<i32>} : memref<2x8xf32, #tpu.memory_space<vmem>>, vector<2x8xf32>,
      %c0_28 = arith.constant 0 : index
      %c0_29 = arith.constant 0 : index
      %45 = vector.load %arg11[%c0_28, %c0_29] : memref<2x8xf32, #tpu.memory_space<vmem>>, vector<2x8xf32>
      %46 = arith.addf %45, %32 : vector<2x8xf32>
      %c0_30 = arith.constant 0 : index
      %c0_31 = arith.constant 0 : index
      %47 = vector.load %arg11[%c0_30, %c0_31] : memref<2x8xf32, #tpu.memory_space<vmem>>, vector<2x8xf32>
      tpu.vector_store %arg11[%c0_30, %c0_31], %46 {strides = array<i32>} : memref<2x8xf32, #tpu.memory_space<vmem>>, vector<2x8xf32>,
    } else {
    }
    %true = arith.constant true
    %10 = arith.xori %7, %true : i1
    %11 = arith.extui %10 : i1 to i32
    %c0_i32_2 = arith.constant 0 : i32
    %12 = arith.cmpi ne, %11, %c0_i32_2 : i32
    scf.if %12 {
      %c0 = arith.constant 0 : index
      %c0_5 = arith.constant 0 : index
      %16 = vector.load %arg12[%c0, %c0_5] : memref<2x1xf32, #tpu.memory_space<vmem>>, vector<2x1xf32>
      %c0_6 = arith.constant 0 : index
      %c0_7 = arith.constant 0 : index
      %17 = vector.load %arg13[%c0_6, %c0_7] : memref<2x1xf32, #tpu.memory_space<vmem>>, vector<2x1xf32>
      %c0_8 = arith.constant 0 : index
      %c0_9 = arith.constant 0 : index
      %18 = vector.load %arg5[%c0_8, %c0_9] : memref<2x1xi32, #tpu.memory_space<vmem>>, vector<2x1xi32>
      %c8_i32_10 = arith.constant 8 : i32
      %19 = arith.muli %arg1, %c8_i32_10 : i32
      %20 = vector.broadcast %19 : i32 to vector<2x1xi32>
      %21 = arith.subi %18, %20 : vector<2x1xi32>
      %22 = tpu.iota {dimensions = array<i32: 1>} : vector<1x8xi32>
      %cst = arith.constant 0.000000e+00 : f32
      %23 = vector.broadcast %cst : f32 to vector<2x8xf32>
      %c0_11 = arith.constant 0 : index
      %c0_12 = arith.constant 0 : index
      %24 = vector.load %arg4[%c0_11, %c0_12] : memref<2x8xf32, #tpu.memory_space<vmem>>, vector<2x8xf32>
      %25 = vector.broadcast %16 : vector<2x1xf32> to vector<2x8xf32>
      %26 = arith.subf %24, %25 : vector<2x8xf32>
      %c0_13 = arith.constant 0 : index
      %c0_14 = arith.constant 0 : index
      %27 = vector.load %arg3[%c0_13, %c0_14] : memref<2x8xf32, #tpu.memory_space<vmem>>, vector<2x8xf32>
      %28 = vector.broadcast %17 : vector<2x1xf32> to vector<2x8xf32>
      %29 = arith.subf %27, %28 : vector<2x8xf32>
      %c0_i32_15 = arith.constant 0 : i32
      %30 = vector.broadcast %c0_i32_15 : i32 to vector<2x1xi32>
      %31 = arith.subi %21, %30 : vector<2x1xi32>
      %32 = vector.broadcast %22 : vector<1x8xi32> to vector<2x8xi32>
      %33 = vector.broadcast %31 : vector<2x1xi32> to vector<2x8xi32>
      %34 = arith.cmpi slt, %32, %33 : vector<2x8xi32>
      %cst_16 = arith.constant 0.000000e+00 : f32
      %35 = vector.broadcast %cst_16 : f32 to vector<2x8xf32>
      %36 = arith.select %34, %26, %35 : vector<2x8xi1>, vector<2x8xf32>
      %cst_17 = arith.constant 0.000000e+00 : f32
      %37 = vector.broadcast %cst_17 : f32 to vector<2x8xf32>
      %38 = arith.select %34, %29, %37 : vector<2x8xi1>, vector<2x8xf32>
      %39 = arith.addf %23, %36 : vector<2x8xf32>
      %40 = arith.addf %23, %38 : vector<2x8xf32>
      %41 = arith.mulf %36, %36 : vector<2x8xf32>
      %42 = arith.addf %23, %41 : vector<2x8xf32>
      %43 = arith.mulf %38, %38 : vector<2x8xf32>
      %44 = arith.addf %23, %43 : vector<2x8xf32>
      %45 = arith.mulf %36, %38 : vector<2x8xf32>
      %46 = arith.addf %23, %45 : vector<2x8xf32>
      %c0_18 = arith.constant 0 : index
      %c0_19 = arith.constant 0 : index
      %47 = vector.load %arg7[%c0_18, %c0_19] : memref<2x8xf32, #tpu.memory_space<vmem>>, vector<2x8xf32>
      %48 = arith.addf %47, %39 : vector<2x8xf32>
      %c0_20 = arith.constant 0 : index
      %c0_21 = arith.constant 0 : index
      %49 = vector.load %arg7[%c0_20, %c0_21] : memref<2x8xf32, #tpu.memory_space<vmem>>, vector<2x8xf32>
      tpu.vector_store %arg7[%c0_20, %c0_21], %48 {strides = array<i32>} : memref<2x8xf32, #tpu.memory_space<vmem>>, vector<2x8xf32>,
      %c0_22 = arith.constant 0 : index
      %c0_23 = arith.constant 0 : index
      %50 = vector.load %arg8[%c0_22, %c0_23] : memref<2x8xf32, #tpu.memory_space<vmem>>, vector<2x8xf32>
      %51 = arith.addf %50, %40 : vector<2x8xf32>
      %c0_24 = arith.constant 0 : index
      %c0_25 = arith.constant 0 : index
      %52 = vector.load %arg8[%c0_24, %c0_25] : memref<2x8xf32, #tpu.memory_space<vmem>>, vector<2x8xf32>
      tpu.vector_store %arg8[%c0_24, %c0_25], %51 {strides = array<i32>} : memref<2x8xf32, #tpu.memory_space<vmem>>, vector<2x8xf32>,
      %c0_26 = arith.constant 0 : index
      %c0_27 = arith.constant 0 : index
      %53 = vector.load %arg9[%c0_26, %c0_27] : memref<2x8xf32, #tpu.memory_space<vmem>>, vector<2x8xf32>
      %54 = arith.addf %53, %42 : vector<2x8xf32>
      %c0_28 = arith.constant 0 : index
      %c0_29 = arith.constant 0 : index
      %55 = vector.load %arg9[%c0_28, %c0_29] : memref<2x8xf32, #tpu.memory_space<vmem>>, vector<2x8xf32>
      tpu.vector_store %arg9[%c0_28, %c0_29], %54 {strides = array<i32>} : memref<2x8xf32, #tpu.memory_space<vmem>>, vector<2x8xf32>,
      %c0_30 = arith.constant 0 : index
      %c0_31 = arith.constant 0 : index
      %56 = vector.load %arg10[%c0_30, %c0_31] : memref<2x8xf32, #tpu.memory_space<vmem>>, vector<2x8xf32>
      %57 = arith.addf %56, %44 : vector<2x8xf32>
      %c0_32 = arith.constant 0 : index
      %c0_33 = arith.constant 0 : index
      %58 = vector.load %arg10[%c0_32, %c0_33] : memref<2x8xf32, #tpu.memory_space<vmem>>, vector<2x8xf32>
      tpu.vector_store %arg10[%c0_32, %c0_33], %57 {strides = array<i32>} : memref<2x8xf32, #tpu.memory_space<vmem>>, vector<2x8xf32>,
      %c0_34 = arith.constant 0 : index
      %c0_35 = arith.constant 0 : index
      %59 = vector.load %arg11[%c0_34, %c0_35] : memref<2x8xf32, #tpu.memory_space<vmem>>, vector<2x8xf32>
      %60 = arith.addf %59, %46 : vector<2x8xf32>
      %c0_36 = arith.constant 0 : index
      %c0_37 = arith.constant 0 : index
      %61 = vector.load %arg11[%c0_36, %c0_37] : memref<2x8xf32, #tpu.memory_space<vmem>>, vector<2x8xf32>
      tpu.vector_store %arg11[%c0_36, %c0_37], %60 {strides = array<i32>} : memref<2x8xf32, #tpu.memory_space<vmem>>, vector<2x8xf32>,
    } else {
    }
    %c0_i32_3 = arith.constant 0 : i32
    %13 = arith.cmpi eq, %arg1, %c0_i32_3 : i32
    %14 = arith.extui %13 : i1 to i32
    %c0_i32_4 = arith.constant 0 : i32
    %15 = arith.cmpi ne, %14, %c0_i32_4 : i32
    scf.if %15 {
      %c0 = arith.constant 0 : index
      %c0_5 = arith.constant 0 : index
      %16 = vector.load %arg5[%c0, %c0_5] : memref<2x1xi32, #tpu.memory_space<vmem>>, vector<2x1xi32>
      %c1_i32_6 = arith.constant 1 : i32
      %17 = vector.broadcast %c1_i32_6 : i32 to vector<2x1xi32>
      %18 = arith.maxsi %16, %17 : vector<2x1xi32>
      %19 = arith.sitofp %18 : vector<2x1xi32> to vector<2x1xf32>
      %c0_7 = arith.constant 0 : index
      %c0_8 = arith.constant 0 : index
      %20 = vector.load %arg7[%c0_7, %c0_8] : memref<2x8xf32, #tpu.memory_space<vmem>>, vector<2x8xf32>
      %cst = arith.constant dense<0.000000e+00> : vector<2xf32>
      %21 = vector.multi_reduction <add>, %20, %cst [1] : vector<2x8xf32> to vector<2xf32>
      %22 = vector.shape_cast %21 : vector<2xf32> to vector<2x1xf32>
      %c0_9 = arith.constant 0 : index
      %c0_10 = arith.constant 0 : index
      %23 = vector.load %arg8[%c0_9, %c0_10] : memref<2x8xf32, #tpu.memory_space<vmem>>, vector<2x8xf32>
      %cst_11 = arith.constant dense<0.000000e+00> : vector<2xf32>
      %24 = vector.multi_reduction <add>, %23, %cst_11 [1] : vector<2x8xf32> to vector<2xf32>
      %25 = vector.shape_cast %24 : vector<2xf32> to vector<2x1xf32>
      %c0_12 = arith.constant 0 : index
      %c0_13 = arith.constant 0 : index
      %26 = vector.load %arg9[%c0_12, %c0_13] : memref<2x8xf32, #tpu.memory_space<vmem>>, vector<2x8xf32>
      %cst_14 = arith.constant dense<0.000000e+00> : vector<2xf32>
      %27 = vector.multi_reduction <add>, %26, %cst_14 [1] : vector<2x8xf32> to vector<2xf32>
      %28 = vector.shape_cast %27 : vector<2xf32> to vector<2x1xf32>
      %c0_15 = arith.constant 0 : index
      %c0_16 = arith.constant 0 : index
      %29 = vector.load %arg10[%c0_15, %c0_16] : memref<2x8xf32, #tpu.memory_space<vmem>>, vector<2x8xf32>
      %cst_17 = arith.constant dense<0.000000e+00> : vector<2xf32>
      %30 = vector.multi_reduction <add>, %29, %cst_17 [1] : vector<2x8xf32> to vector<2xf32>
      %31 = vector.shape_cast %30 : vector<2xf32> to vector<2x1xf32>
      %c0_18 = arith.constant 0 : index
      %c0_19 = arith.constant 0 : index
      %32 = vector.load %arg11[%c0_18, %c0_19] : memref<2x8xf32, #tpu.memory_space<vmem>>, vector<2x8xf32>
      %cst_20 = arith.constant dense<0.000000e+00> : vector<2xf32>
      %33 = vector.multi_reduction <add>, %32, %cst_20 [1] : vector<2x8xf32> to vector<2xf32>
      %34 = vector.shape_cast %33 : vector<2xf32> to vector<2x1xf32>
      %35 = arith.divf %22, %19 : vector<2x1xf32>
      %36 = arith.divf %25, %19 : vector<2x1xf32>
      %37 = arith.divf %28, %19 : vector<2x1xf32>
      %38 = arith.mulf %35, %35 : vector<2x1xf32>
      %39 = arith.subf %37, %38 : vector<2x1xf32>
      %40 = arith.divf %31, %19 : vector<2x1xf32>
      %41 = arith.mulf %36, %36 : vector<2x1xf32>
      %42 = arith.subf %40, %41 : vector<2x1xf32>
      %43 = arith.divf %34, %19 : vector<2x1xf32>
      %44 = arith.mulf %35, %36 : vector<2x1xf32>
      %45 = arith.subf %43, %44 : vector<2x1xf32>
      %c0_21 = arith.constant 0 : index
      %c0_22 = arith.constant 0 : index
      %46 = vector.load %arg12[%c0_21, %c0_22] : memref<2x1xf32, #tpu.memory_space<vmem>>, vector<2x1xf32>
      %47 = arith.addf %35, %46 : vector<2x1xf32>
      %c0_23 = arith.constant 0 : index
      %c0_24 = arith.constant 0 : index
      %48 = vector.load %arg13[%c0_23, %c0_24] : memref<2x1xf32, #tpu.memory_space<vmem>>, vector<2x1xf32>
      %49 = arith.addf %36, %48 : vector<2x1xf32>
      %50 = arith.subf %47, %49 : vector<2x1xf32>
      %51 = arith.addf %39, %42 : vector<2x1xf32>
      %52 = arith.mulf %50, %50 : vector<2x1xf32>
      %53 = arith.addf %51, %52 : vector<2x1xf32>
      %cst_25 = arith.constant 2.000000e+00 : f32
      %54 = vector.broadcast %cst_25 : f32 to vector<2x1xf32>
      %55 = arith.mulf %54, %45 : vector<2x1xf32>
      %56 = arith.divf %55, %53 : vector<2x1xf32>
      %c0_i32_26 = arith.constant 0 : i32
      %57 = vector.broadcast %c0_i32_26 : i32 to vector<2x1xi32>
      %58 = arith.cmpi sgt, %16, %57 : vector<2x1xi32>
      %cst_27 = arith.constant 0.000000e+00 : f32
      %59 = vector.broadcast %cst_27 : f32 to vector<2x1xf32>
      %60 = arith.select %58, %56, %59 : vector<2x1xi1>, vector<2x1xf32>
      %c0_28 = arith.constant 0 : index
      %c0_29 = arith.constant 0 : index
      %61 = vector.load %arg6[%c0_28, %c0_29] : memref<2x1xf32, #tpu.memory_space<vmem>>, vector<2x1xf32>
      tpu.vector_store %arg6[%c0_28, %c0_29], %60 {strides = array<i32>} : memref<2x1xf32, #tpu.memory_space<vmem>>, vector<2x1xf32>,
    } else {
    }
    return
  }
  func.func @transform_0(%arg0: i32, %arg1: i32, %arg2: memref<1xi32, #tpu.memory_space<smem>>) -> (i32, i32) {
    %c0_i32 = arith.constant 0 : i32
    return %arg0, %arg1 : i32, i32
  }
  func.func @transform_1(%arg0: i32, %arg1: i32, %arg2: memref<1xi32, #tpu.memory_space<smem>>) -> (i32, i32) {
    %c0_i32 = arith.constant 0 : i32
    return %arg0, %arg1 : i32, i32
  }
  func.func @transform_2(%arg0: i32, %arg1: i32, %arg2: memref<1xi32, #tpu.memory_space<smem>>) -> (i32, i32) {
    %c0_i32 = arith.constant 0 : i32
    %c0_i32_0 = arith.constant 0 : i32
    return %arg0, %c0_i32 : i32, i32
  }
  func.func @transform_3(%arg0: i32, %arg1: i32, %arg2: memref<1xi32, #tpu.memory_space<smem>>) -> (i32, i32) {
    %c0_i32 = arith.constant 0 : i32
    %c0_i32_0 = arith.constant 0 : i32
    return %arg0, %c0_i32 : i32, i32
  }
}

</mosaic_0001>

<bundles_post_ra>
// kernel: tpu_custom_call.1
= control target key start
LH: loop header
LB: loop body
LE: loop exit
PB: predicated region body
PF: predicated region fallthrough
CT: control target
= control target key end

     0   :  { %vm20_vm0 = vcmask 58368   ;;  %vm27_vm1 = vcmask 1024   ;;  %v207_v0 = vmov 0.0   ;;  %s291_s0 = inlined_call_operand.<no memory space> [shape: s32[1], index: 0, kind: input, shape index: {}]   ;;  %s292_s3 = inlined_call_operand.vmem [shape: s32[2,1], index: 3, kind: input, shape index: {}]   ;;  %s293_s4 = inlined_call_operand.vmem [shape: f32[2,1], index: 4, kind: output, shape index: {}]   ;;  %s294_s2 = inlined_call_operand.vmem [shape: f32[2,8], index: 2, kind: input, shape index: {}]   ;;  %s295_s1 = inlined_call_operand.vmem [shape: f32[2,8], index: 1, kind: input, shape index: {}]  }
   0x1   :  { %21 = vst.msk [vmem:[#allocation2] sm:$0x3] %vm20_vm0, %v207_v0  ;;  %22 = vst.msk [vmem:[#allocation3] sm:$0x3] %vm20_vm0, %v207_v0  ;;  %v26_v1 = vld [vmem:[%s294_s2] sm:$0x3] }
   0x2   :  { %23 = vst.msk [vmem:[#allocation4] sm:$0x3] %vm20_vm0, %v207_v0  ;;  %24 = vst.msk [vmem:[#allocation5] sm:$0x3] %vm20_vm0, %v207_v0  ;;  %v29_v2 = vld [vmem:[%s295_s1] sm:$0x3] }
   0x3   :  { %25 = vst.msk [vmem:[#allocation6] sm:$0x3] %vm20_vm0, %v207_v0  ;;  %p194_p0 = scmp.lt.s32.totalorder %s291_s0, 8 }
   0x4   :  { %28 = vst.msk [vmem:[#allocation7] sm:$0x3] %vm27_vm1, %v26_v1  ;;  %30 = vst.msk [vmem:[#allocation8] sm:$0x3] %vm27_vm1, %v29_v2  ;;  %v208_v4 = vmov (!%p194_p0), 0  }
   0x5   :  { %37 = sbr.rel (%p194_p0) target bundleno = 151 (0x97), region = 21  ;;  %200 = vset.pattern.permute.xlu0 (!%p194_p0), %v208_v4  ;;  %v40_v6 = vld [vmem:[%s294_s2] sm:$0x3] (!%p194_p0) }
   0x6   :  { %v47_v11 = vld [vmem:[%s295_s1] sm:$0x3] (!%p194_p0) }
   0x8   :  { %v62_v7 = vld [vmem:[#allocation2] sm:$0x3] (!%p194_p0)  ;;  %v66_v14 = vld [vmem:[#allocation3] sm:$0x3] (!%p194_p0) }
   0x9   :  { %v69_v10 = vld [vmem:[#allocation4] sm:$0x3] (!%p194_p0)  ;;  %v72_v18 = vld [vmem:[#allocation5] sm:$0x3] (!%p194_p0) }
   0xa   :  { %v75_v19 = vld [vmem:[#allocation6] sm:$0x3] (!%p194_p0) }
   0xb   :  { %v38_v3 = vld [vmem:[#allocation7] sm:$0x3] (!%p194_p0)  ;;  %v39_v5 = vld [vmem:[#allocation8] sm:$0x3] (!%p194_p0) }
   0xc   :  { %43 = vperm.xlu0 %200, %v38_v3  }
  0x10   :  { %50 = vperm.xlu0 %200, %v39_v5  }
  0x8b   :  { %v44_v8 = vpop.permute.xlu0 %43 }
  0x8c   :  { %v46_v9 = vsub.f32 %v40_v6, %v44_v8 }
  0x8e   :  { %v56_v12 = vmul.f32 %v46_v9, %v46_v9  ;;  %v63_v13 = vadd.f32 %v62_v7, %v46_v9 }
  0x8f   :  { %v51_v15 = vpop.permute.xlu0 %50 }
  0x90   :  { %65 = vst.msk [vmem:[#allocation2] sm:$0x3] %vm20_vm0, %v63_v13  ;;  %v70_v16 = vadd.f32 %v69_v10, %v56_v12  ;;  %v53_v17 = vsub.f32 %v47_v11, %v51_v15 }
  0x92   :  { %71 = vst.msk [vmem:[#allocation4] sm:$0x3] %vm20_vm0, %v70_v16  ;;  %v58_v20 = vmul.f32 %v53_v17, %v53_v17  ;;  %v60_v21 = vmul.f32 %v53_v17, %v46_v9  ;;  %v67_v22 = vadd.f32 %v66_v14, %v53_v17 }
  0x94   :  { %68 = vst.msk [vmem:[#allocation3] sm:$0x3] %vm20_vm0, %v67_v22  ;;  %v73_v23 = vadd.f32 %v72_v18, %v58_v20  ;;  %v76_v24 = vadd.f32 %v75_v19, %v60_v21 }
  0x96   :  { %74 = vst.msk [vmem:[#allocation5] sm:$0x3] %vm20_vm0, %v73_v23  ;;  %77 = vst.msk [vmem:[#allocation6] sm:$0x3] %vm20_vm0, %v76_v24 }
  0x97 PF:  { %p196_p1 = scmp.ge.s32.totalorder %s291_s0, 8 }
  0x98   :  { %v82_v25 = vld [vmem:[#allocation7] sm:$0x3] (!%p196_p1)  ;;  %v84_v26 = vld [vmem:[%s292_s3] sm:$0x3] (!%p196_p1)  ;;  %v209_v27 = vmov (!%p196_p1), 0   ;;  %v88_v29 = vlaneseq (!%p196_p1) }
  0x99   :  { %81 = sbr.rel (%p196_p1) target bundleno = 294 (0x126), region = 25  ;;  %201 = vset.pattern.permute.xlu0 (!%p196_p1), %v209_v27  ;;  %202 = vset.pattern.permute.xlu1 (!%p196_p1), %v209_v27  ;;  %v83_v28 = vld [vmem:[#allocation8] sm:$0x3] (!%p196_p1)  ;;  %v90_v31 = vld [vmem:[%s294_s2] sm:$0x3] (!%p196_p1) }
  0x9a   :  { %93 = vperm.xlu0 (!%p196_p1), %201, %v82_v25   ;;  %105 = vperm.xlu1 (!%p196_p1), %202, %v84_v26   ;;  %v89_v30 = vand.u32 (!%p196_p1), 127, %v88_v29  ;;  %v118_v35 = vld [vmem:[#allocation2] sm:$0x3] (!%p196_p1)  ;;  %v125_v37 = vld [vmem:[#allocation4] sm:$0x3] (!%p196_p1) }
  0x9b   :  { %v97_v36 = vld [vmem:[%s295_s1] sm:$0x3] (!%p196_p1)  ;;  %v122_v42 = vld [vmem:[#allocation3] sm:$0x3] (!%p196_p1) }
  0x9d   :  { %v128_v45 = vld [vmem:[#allocation5] sm:$0x3] (!%p196_p1)  ;;  %v131_v46 = vld [vmem:[#allocation6] sm:$0x3] (!%p196_p1) }
  0x9e   :  { %100 = vperm.xlu0 (!%p196_p1), %201, %v83_v28  }
 0x119   :  { %v94_v32 = vpop.permute.xlu0 %93  ;;  %v106_v33 = vpop.permute.xlu1 %105 }
 0x11a   :  { %v96_v34 = vsub.f32 %v90_v31, %v94_v32  ;;  %vm107_vm2 = vcmp.lt.s32.totalorder %v89_v30, %v106_v33 }
 0x11c   :  { %v108_v38 = vsel %vm107_vm2, %v96_v34, 0.0 }
 0x11d   :  { %v112_v39 = vmul.f32 %v108_v38, %v108_v38  ;;  %v119_v40 = vadd.f32 %v118_v35, %v108_v38  ;;  %v101_v41 = vpop.permute.xlu0 %100 }
 0x11e   :  { %v103_v43 = vsub.f32 %v97_v36, %v101_v41 }
 0x11f   :  { %121 = vst.msk [vmem:[#allocation2] sm:$0x3] %vm20_vm0, %v119_v40  ;;  %v126_v44 = vadd.f32 %v125_v37, %v112_v39 }
 0x120   :  { %v109_v47 = vsel %vm107_vm2, %v103_v43, 0.0 }
 0x121   :  { %127 = vst.msk [vmem:[#allocation4] sm:$0x3] %vm20_vm0, %v126_v44  ;;  %v114_v48 = vmul.f32 %v109_v47, %v109_v47  ;;  %v116_v49 = vmul.f32 %v109_v47, %v108_v38  ;;  %v123_v50 = vadd.f32 %v122_v42, %v109_v47 }
 0x123   :  { %124 = vst.msk [vmem:[#allocation3] sm:$0x3] %vm20_vm0, %v123_v50  ;;  %v129_v51 = vadd.f32 %v128_v45, %v114_v48  ;;  %v132_v52 = vadd.f32 %v131_v46, %v116_v49 }
 0x125   :  { %130 = vst.msk [vmem:[#allocation5] sm:$0x3] %vm20_vm0, %v129_v51  ;;  %133 = vst.msk [vmem:[#allocation6] sm:$0x3] %vm20_vm0, %v132_v52 }
 0x126 PF:  { %v141_v53 = vld [vmem:[#allocation2] sm:$0x3]  ;;  %v174_v6 = vld [vmem:[#allocation7] sm:$0x3]  ;;  %v176_v7 = vld [vmem:[#allocation8] sm:$0x3] }
 0x127   :  { %v143_v56 = vsel %vm20_vm0, %v141_v53, 0.0  ;;  %v137_v63 = vld [vmem:[%s292_s3] sm:$0x3] }
 0x128   :  { %v150_v54 = vld [vmem:[#allocation4] sm:$0x3]  ;;  %144 = vadd.xlane.f32.xlu0 %v143_v56  ;;  %vm138_vm3 = vcmp.gt.s32.totalorder %v137_v63, 1  ;;  %vm185_vm4 = vcmp.gt.s32.totalorder %v137_v63, 0 }
 0x129   :  { %v151_v57 = vsel %vm20_vm0, %v150_v54, 0.0  ;;  %v139_v0 = vsel %vm138_vm3, %v137_v63, 1 }
 0x12a   :  { %v146_v55 = vld [vmem:[#allocation3] sm:$0x3]  ;;  %152 = vadd.xlane.f32.xlu1 %v151_v57  ;;  %v140_v1 = vcvt.s32.f32 %v139_v0 }
 0x12b   :  { %v147_v59 = vsel %vm20_vm0, %v146_v55, 0.0 }
 0x12c   :  { %v154_v58 = vld [vmem:[#allocation5] sm:$0x3]  ;;  %v158_v61 = vld [vmem:[#allocation6] sm:$0x3]  ;;  %148 = vadd.xlane.f32.xlu0 %v147_v59  ;;  %203 = vrcp.f32 %v140_v1 }
 0x12d   :  { %v155_v60 = vsel %vm20_vm0, %v154_v58, 0.0  ;;  %v159_v62 = vsel %vm20_vm0, %v158_v61, 0.0 }
 0x12e   :  { %156 = vadd.xlane.f32.xlu1 %v155_v60 }
 0x130   :  { %160 = vadd.xlane.f32.xlu0 %v159_v62 }
 0x136   :  { %v204_v2 = vpop.eup %203 }
 0x1b5   :  { %v145_v3 = vpop.xlane.xlu0 %144 }
 0x1b6   :  { %v163_v5 = vmul.f32 %v204_v2, %v145_v3 }
 0x1b7   :  { %v153_v4 = vpop.xlane.xlu1 %152 }
 0x1b8   :  { %v165_v10 = vmul.f32 %v204_v2, %v153_v4  ;;  %v166_v11 = vmul.f32 %v163_v5, %v163_v5  ;;  %v175_v14 = vadd.f32 %v174_v6, %v163_v5 }
 0x1b9   :  { %v149_v8 = vpop.xlane.xlu0 %148 }
 0x1ba   :  { %v164_v12 = vmul.f32 %v204_v2, %v149_v8  ;;  %v167_v17 = vsub.f32 %v165_v10, %v166_v11 }
 0x1bb   :  { %v157_v9 = vpop.xlane.xlu1 %156 }
 0x1bc   :  { %v168_v13 = vmul.f32 %v204_v2, %v157_v9  ;;  %v177_v15 = vadd.f32 %v176_v7, %v164_v12  ;;  %v169_v16 = vmul.f32 %v164_v12, %v164_v12  ;;  %v172_v25 = vmul.f32 %v164_v12, %v163_v5 }
 0x1bd   :  { %v161_v23 = vpop.xlane.xlu0 %160 }
 0x1be   :  { %v178_v18 = vsub.f32 %v175_v14, %v177_v15  ;;  %v170_v19 = vsub.f32 %v168_v13, %v169_v16  ;;  %v171_v24 = vmul.f32 %v204_v2, %v161_v23 }
 0x1c0   :  { %v180_v20 = vmul.f32 %v178_v18, %v178_v18  ;;  %v179_v21 = vadd.f32 %v170_v19, %v167_v17  ;;  %v173_v26 = vsub.f32 %v171_v24, %v172_v25 }
 0x1c2   :  { %v181_v22 = vadd.f32 %v180_v20, %v179_v21  ;;  %v182_v27 = vmul.f32 2.0, %v173_v26 }
 0x1c4   :  { %205 = vrcp.f32 %v181_v22 }
 0x1ce   :  { %v206_v28 = vpop.eup %205 }
 0x1cf   :  { %v184_v29 = vmul.f32 %v206_v28, %v182_v27 }
 0x1d1   :  { %v186_v30 = vsel %vm185_vm4, %v184_v29, 0.0 }
 0x1d2   :  { %188 = vst.msk [vmem:[%s293_s4] sm:$0x3] %vm27_vm1, %v186_v30 }

</bundles_post_ra>
